<compile_context>
chip_gen: v7x
topology: tpu7x:2x2x1
jax: 0.10.0
libtpu: 0.0.40
codegen_flags: <defaults>
</compile_context>

<pallas_src>
import functools

import jax
import jax.numpy as jnp
from jax import lax
from jax.experimental import pallas as pl
from jax.experimental.pallas import tpu as pltpu

_MIB = 1024 * 1024


# ----------------------------- chip introspection ---------------------------

def _device_kind():
    try:
        return jax.devices()[0].device_kind.lower()
    except Exception:
        return ""


def _vmem_capacity_bytes():
    """Per-TensorCore VMEM capacity, with conservative fallbacks."""
    try:
        return int(pltpu.get_tpu_info().vmem_capacity_bytes)
    except Exception:
        pass
    kind = _device_kind()
    if "v7" in kind:
        return 64 * _MIB
    if any(g in kind for g in ("v4", "v5", "v6")):
        return 128 * _MIB
    return 64 * _MIB  # unknown chip: be conservative


def _is_v5e():
    kind = _device_kind()
    return ("v5e" in kind) or ("v5 lite" in kind) or ("v5litepod" in kind)


# ------------------------------- tile selection ------------------------------

def _select_q_tile(S, Dk, Dv, qsz, ksz, vsz, osz, asz, has_mask, vmem_budget,
                   v5e):
    """Largest MXU-friendly q tile whose double-buffered VMEM footprint fits."""
    # Resident (double-buffered) K/V for one batch element.
    fixed = 2 * S * (Dk * ksz + Dv * vsz)
    # Per-q-row cost: q in, ctx out, attn out, int8 mask (all double-buffered)
    # plus ~4x f32 row-wide softmax temporaries (scores / exp / attn / misc).
    per_tq = (2 * Dk * qsz + 2 * Dv * osz
              + S * (16 + 2 * asz + (2 if has_mask else 0)))
    avail = vmem_budget - fixed

    cap = 256 if v5e else 512            # v5e MXU is 128-wide; 512 only bloats
    s_cap = -(-S // 8) * 8               # don't pick a tile wildly bigger than S
    for t in (512, 256, 128, 64, 32, 16, 8):
        if t <= cap and t <= s_cap and avail > 0 and t * per_tq <= avail:
            return t
    # Budget exhausted (huge S) or tiny S: smallest legal sublane-aligned tile.
    # TODO(synk): K-streaming + online softmax removes this cliff for huge S.
    return 8 if S >= 8 else S


# --------------------------------- kernel ------------------------------------

def _sdpa_kernel(q_ref, k_ref, v_ref, *rest, inv_scale, has_mask, return_attn):
    # Refs: q [TQ, Dk], k [S, Dk], v [S, Dv], (mask [TQ, S]), ctx [TQ, Dv],
    #       (attn [TQ, S]).
    if has_mask:
        mask_ref, rest = rest[0], rest[1:]
    ctx_ref = rest[0]
    attn_ref = rest[1] if return_attn else None

    # scores = (q @ k^T) / sqrt(dk); contract last axes (no XLU transpose),
    # scale the f32 scores so low-precision q is not pre-rounded.
    scores = lax.dot_general(
        q_ref[...], k_ref[...],
        dimension_numbers=(((1,), (1,)), ((), ())),
        preferred_element_type=jnp.float32,
    ) * jnp.float32(inv_scale)

    if has_mask:
        # masked_fill_(attn_mask, -1e9): mask is int8, nonzero == True.
        scores = jnp.where(mask_ref[...] != 0, jnp.float32(-1.0e9), scores)

    # Numerically stable softmax over the full key row.
    m = jnp.max(scores, axis=-1, keepdims=True)
    e = jnp.exp(scores - m)
    inv_l = 1.0 / jnp.sum(e, axis=-1, keepdims=True)   # one recip per row
    attn = e * inv_l

    ctx = lax.dot_general(
        attn.astype(v_ref.dtype), v_ref[...],
        dimension_numbers=(((1,), (0,)), ((), ())),
        preferred_element_type=jnp.float32,
    )
    ctx_ref[...] = ctx.astype(ctx_ref.dtype)
    if return_attn:
        attn_ref[...] = attn.astype(attn_ref.dtype)


# --------------------------------- wrapper -----------------------------------

def scaled_dot_product_attention(q, k, v, attn_mask=None, *, return_attn=True):
    """q: [B, S, Dk], k: [B, S, Dk], v: [B, S, Dv].
    attn_mask: optional bool/int [B, S, S]; True entries get -1e9 before softmax.
    Returns (context [B, S, Dv], attn [B, S, S] in q.dtype) when return_attn,
    else just context."""
    B, S, Dk = q.shape
    Dv = v.shape[-1]
    inv_scale = 1.0 / float(Dk) ** 0.5
    has_mask = attn_mask is not None

    # Per-chip VMEM budget (leave headroom for compiler internals).
    vmem_cap = _vmem_capacity_bytes()
    vmem_limit = int(vmem_cap * 0.85)
    tile_budget = int(vmem_limit * 0.75)

    attn_dtype = q.dtype
    TQ = _select_q_tile(
        S, Dk, Dv,
        q.dtype.itemsize, k.dtype.itemsize, v.dtype.itemsize,
        q.dtype.itemsize, attn_dtype.itemsize if return_attn else 0,
        has_mask, tile_budget, _is_v5e())

    # Pad the query axis (only) to a multiple of TQ; padded rows are sliced off.
    n_q = -(-S // TQ)
    S_pad = n_q * TQ
    q_in = q
    mask_in = attn_mask.astype(jnp.int8) if has_mask else None
    if S_pad != S:
        pad = S_pad - S
        q_in = jnp.pad(q, ((0, 0), (0, pad), (0, 0)))
        if has_mask:
            mask_in = jnp.pad(mask_in, ((0, 0), (0, pad), (0, 0)))

    grid = (B, n_q)

    q_spec = pl.BlockSpec((None, TQ, Dk), lambda b, i: (b, i, 0))
    # K / V: indexed only by b -> stay resident across the q-tile axis.
    k_spec = pl.BlockSpec((None, S, Dk), lambda b, i: (b, 0, 0))
    v_spec = pl.BlockSpec((None, S, Dv), lambda b, i: (b, 0, 0))
    ctx_spec = pl.BlockSpec((None, TQ, Dv), lambda b, i: (b, i, 0))

    in_specs = [q_spec, k_spec, v_spec]
    call_args = [q_in, k, v]
    if has_mask:
        in_specs.append(pl.BlockSpec((None, TQ, S), lambda b, i: (b, i, 0)))
        call_args.append(mask_in)

    out_specs = [ctx_spec]
    out_shapes = [jax.ShapeDtypeStruct((B, S_pad, Dv), q.dtype)]
    if return_attn:
        out_specs.append(pl.BlockSpec((None, TQ, S), lambda b, i: (b, i, 0)))
        out_shapes.append(jax.ShapeDtypeStruct((B, S_pad, S), attn_dtype))

    # Split megacore work on the batch axis when possible so each core fetches
    # K/V for its own batch elements only.
    if B >= 2:
        dim_sem = ("parallel", "arbitrary")
    else:
        dim_sem = ("parallel", "parallel")

    kernel = functools.partial(
        _sdpa_kernel, inv_scale=inv_scale, has_mask=has_mask,
        return_attn=return_attn)

    outs = pl.pallas_call(
        kernel,
        grid_spec=pltpu.PrefetchScalarGridSpec(
            num_scalar_prefetch=0,
            grid=grid,
            in_specs=in_specs,
            out_specs=out_specs,
        ),
        out_shape=tuple(out_shapes),
        compiler_params=pltpu.CompilerParams(
            dimension_semantics=dim_sem,
            vmem_limit_bytes=vmem_limit,
        ),
    )(*call_args)

    if return_attn:
        ctx_pad, attn_pad = outs
        return ctx_pad[:, :S, :], attn_pad[:, :S, :]
    (ctx_pad,) = outs
    return ctx_pad[:, :S, :]


# -------------------------------- reference ----------------------------------

def _reference(q, k, v, attn_mask=None):
    scale = jnp.sqrt(jnp.float32(q.shape[-1]))
    scores = jnp.einsum("bqd,bkd->bqk", q, k) / scale
    if attn_mask is not None:
        scores = jnp.where(attn_mask, -1.0e9, scores)
    attn = jax.nn.softmax(scores, axis=-1)
    ctx = jnp.einsum("bqk,bkd->bqd", attn, v)
    return ctx, attn


if __name__ == "__main__":
    B, S, Dk, Dv = 2, 8, 32, 32
    key = jax.random.PRNGKey(0)
    kq, kk, kv, km = jax.random.split(key, 4)
    q = jax.random.normal(kq, (B, S, Dk), dtype=jnp.float32)
    k = jax.random.normal(kk, (B, S, Dk), dtype=jnp.float32)
    v = jax.random.normal(kv, (B, S, Dv), dtype=jnp.float32)
    attn_mask = jax.random.bernoulli(km, 0.2, (B, S, S))

    # No-mask path (mirrors attn_mask=None in the PyTorch forward).
    ctx, attn = scaled_dot_product_attention(q, k, v)
    jax.block_until_ready((ctx, attn))
    ctx_ref, attn_ref = _reference(q, k, v)
    assert jnp.allclose(ctx, ctx_ref, atol=1e-5, rtol=1e-5)
    assert jnp.allclose(attn, attn_ref, atol=1e-5, rtol=1e-5)

    # Masked path.
    ctx_m, attn_m = scaled_dot_product_attention(q, k, v, attn_mask)
    jax.block_until_ready((ctx_m, attn_m))
    ctx_mr, attn_mr = _reference(q, k, v, attn_mask)
    assert jnp.allclose(ctx_m, ctx_mr, atol=1e-5, rtol=1e-5)
    assert jnp.allclose(attn_m, attn_mr, atol=1e-5, rtol=1e-5)

    # Fast path: skip the [B,S,S] attention writeback entirely.
    ctx_f = scaled_dot_product_attention(q, k, v, attn_mask, return_attn=False)
    jax.block_until_ready(ctx_f)
    assert jnp.allclose(ctx_f, ctx_mr, atol=1e-5, rtol=1e-5)

    print("KERNEL_OK")
</pallas_src>

<mosaic_0001>
module attributes {stable_mosaic.version = 11 : i64} {
  func.func @_sdpa_kernel(%arg0: i32, %arg1: i32, %arg2: memref<1x8x32xf32, #tpu.memory_space<vmem>>, %arg3: memref<1x8x32xf32, #tpu.memory_space<vmem>>, %arg4: memref<1x8x32xf32, #tpu.memory_space<vmem>>, %arg5: memref<1x8x32xf32, #tpu.memory_space<vmem>>, %arg6: memref<1x8x8xf32, #tpu.memory_space<vmem>>) attributes {dimension_semantics = [#tpu.dimension_semantics<parallel>, #tpu.dimension_semantics<arbitrary>], iteration_bounds = array<i64: 2, 1>, scalar_prefetch = 0 : i64, scratch_operands = 0 : i64, tpu.core_type = #tpu.core_type<tc>, window_params = [{transform_indices = @transform_0, window_bounds = array<i64: 1, 8, 32>}, {transform_indices = @transform_1, window_bounds = array<i64: 1, 8, 32>}, {transform_indices = @transform_2, window_bounds = array<i64: 1, 8, 32>}, {transform_indices = @transform_3, window_bounds = array<i64: 1, 8, 32>}, {transform_indices = @transform_4, window_bounds = array<i64: 1, 8, 8>}]} {
    %c0 = arith.constant 0 : index
    %c0_0 = arith.constant 0 : index
    %c0_1 = arith.constant 0 : index
    %0 = vector.load %arg2[%c0, %c0_0, %c0_1] : memref<1x8x32xf32, #tpu.memory_space<vmem>>, vector<1x8x32xf32>
    %1 = vector.shape_cast %0 : vector<1x8x32xf32> to vector<8x32xf32>
    %c0_2 = arith.constant 0 : index
    %c0_3 = arith.constant 0 : index
    %c0_4 = arith.constant 0 : index
    %2 = vector.load %arg3[%c0_2, %c0_3, %c0_4] : memref<1x8x32xf32, #tpu.memory_space<vmem>>, vector<1x8x32xf32>
    %3 = vector.shape_cast %2 : vector<1x8x32xf32> to vector<8x32xf32>
    %cst = arith.constant dense<0.000000e+00> : vector<8x8xf32>
    %4 = tpu.matmul %1, %3, %cst {dimension_numbers = #tpu.dot_dimension_numbers<[1], [1], [0], [0], [0, 0, 1, 0], [], []>} : vector<8x32xf32>, vector<8x32xf32>, vector<8x8xf32> -> vector<8x8xf32>
    %cst_5 = arith.constant 0.176776692 : f32
    %5 = vector.broadcast %cst_5 : f32 to vector<8x8xf32>
    %6 = arith.mulf %4, %5 : vector<8x8xf32>
    %cst_6 = arith.constant dense<0xFF800000> : vector<8xf32>
    %7 = vector.multi_reduction <maximumf>, %6, %cst_6 [1] : vector<8x8xf32> to vector<8xf32>
    %8 = vector.shape_cast %7 : vector<8xf32> to vector<8x1xf32>
    %9 = vector.broadcast %8 : vector<8x1xf32> to vector<8x8xf32>
    %10 = arith.subf %6, %9 : vector<8x8xf32>
    %11 = math.exp %10 : vector<8x8xf32>
    %cst_7 = arith.constant dense<0.000000e+00> : vector<8xf32>
    %12 = vector.multi_reduction <add>, %11, %cst_7 [1] : vector<8x8xf32> to vector<8xf32>
    %13 = vector.shape_cast %12 : vector<8xf32> to vector<8x1xf32>
    %cst_8 = arith.constant 1.000000e+00 : f32
    %14 = vector.broadcast %cst_8 : f32 to vector<8x1xf32>
    %15 = arith.divf %14, %13 : vector<8x1xf32>
    %16 = vector.broadcast %15 : vector<8x1xf32> to vector<8x8xf32>
    %17 = arith.mulf %11, %16 : vector<8x8xf32>
    %c0_9 = arith.constant 0 : index
    %c0_10 = arith.constant 0 : index
    %c0_11 = arith.constant 0 : index
    %18 = vector.load %arg4[%c0_9, %c0_10, %c0_11] : memref<1x8x32xf32, #tpu.memory_space<vmem>>, vector<1x8x32xf32>
    %19 = vector.shape_cast %18 : vector<1x8x32xf32> to vector<8x32xf32>
    %cst_12 = arith.constant dense<0.000000e+00> : vector<8x32xf32>
    %20 = tpu.matmul %17, %19, %cst_12 {dimension_numbers = #tpu.dot_dimension_numbers<[1], [0], [0], [1], [0, 0, 1, 1], [], []>} : vector<8x8xf32>, vector<8x32xf32>, vector<8x32xf32> -> vector<8x32xf32>
    %c0_13 = arith.constant 0 : index
    %c0_14 = arith.constant 0 : index
    %c0_15 = arith.constant 0 : index
    %21 = vector.load %arg5[%c0_13, %c0_14, %c0_15] : memref<1x8x32xf32, #tpu.memory_space<vmem>>, vector<1x8x32xf32>
    %22 = vector.shape_cast %21 : vector<1x8x32xf32> to vector<8x32xf32>
    %23 = vector.shape_cast %20 : vector<8x32xf32> to vector<1x8x32xf32>
    tpu.vector_store %arg5[%c0_13, %c0_14, %c0_15], %23 {strides = array<i32>} : memref<1x8x32xf32, #tpu.memory_space<vmem>>, vector<1x8x32xf32>,
    %c0_16 = arith.constant 0 : index
    %c0_17 = arith.constant 0 : index
    %c0_18 = arith.constant 0 : index
    %24 = vector.load %arg6[%c0_16, %c0_17, %c0_18] : memref<1x8x8xf32, #tpu.memory_space<vmem>>, vector<1x8x8xf32>
    %25 = vector.shape_cast %24 : vector<1x8x8xf32> to vector<8x8xf32>
    %26 = vector.shape_cast %17 : vector<8x8xf32> to vector<1x8x8xf32>
    tpu.vector_store %arg6[%c0_16, %c0_17, %c0_18], %26 {strides = array<i32>} : memref<1x8x8xf32, #tpu.memory_space<vmem>>, vector<1x8x8xf32>,
    return
  }
  func.func @transform_0(%arg0: i32, %arg1: i32) -> (i32, i32, i32) {
    %c0_i32 = arith.constant 0 : i32
    %c0_i32_0 = arith.constant 0 : i32
    return %arg0, %arg1, %c0_i32 : i32, i32, i32
  }
  func.func @transform_1(%arg0: i32, %arg1: i32) -> (i32, i32, i32) {
    %c0_i32 = arith.constant 0 : i32
    %c0_i32_0 = arith.constant 0 : i32
    %c0_i32_1 = arith.constant 0 : i32
    return %arg0, %c0_i32, %c0_i32_0 : i32, i32, i32
  }
  func.func @transform_2(%arg0: i32, %arg1: i32) -> (i32, i32, i32) {
    %c0_i32 = arith.constant 0 : i32
    %c0_i32_0 = arith.constant 0 : i32
    %c0_i32_1 = arith.constant 0 : i32
    return %arg0, %c0_i32, %c0_i32_0 : i32, i32, i32
  }
  func.func @transform_3(%arg0: i32, %arg1: i32) -> (i32, i32, i32) {
    %c0_i32 = arith.constant 0 : i32
    %c0_i32_0 = arith.constant 0 : i32
    return %arg0, %arg1, %c0_i32 : i32, i32, i32
  }
  func.func @transform_4(%arg0: i32, %arg1: i32) -> (i32, i32, i32) {
    %c0_i32 = arith.constant 0 : i32
    %c0_i32_0 = arith.constant 0 : i32
    return %arg0, %arg1, %c0_i32 : i32, i32, i32
  }
}

</mosaic_0001>

<bundles_post_ra>
// kernel: tpu_custom_call.1
= control target key start
LH: loop header
LB: loop body
LE: loop exit
PB: predicated region body
PF: predicated region fallthrough
CT: control target
= control target key end

     0   :  { %s1336_s0 = inlined_call_operand.hbm [shape: f32[2,8,32], index: 0, kind: input, shape index: {}]   ;;  %s1337_s1 = inlined_call_operand.hbm [shape: f32[2,8,32], index: 1, kind: input, shape index: {}]   ;;  %s1338_s2 = inlined_call_operand.hbm [shape: f32[2,8,32], index: 2, kind: input, shape index: {}]   ;;  %s1339_s3 = inlined_call_operand.hbm [shape: f32[2,8,32], index: 3, kind: output, shape index: {0}]   ;;  %s1340_s4 = inlined_call_operand.hbm [shape: f32[2,8,8], index: 4, kind: output, shape index: {1}]  }
   0x1   :  { %1349 = sst [smem:[#allocation19_spill]] %s1337_s1 }
   0x2   :  { %10 = vsyncpa [#allocation3], 0 }
   0x3   :  { %12 = vsyncpa [#allocation3 + $0x1], 0 }
   0x4   :  { %13 = vsyncpa [#allocation6], 0 }
   0x5   :  { %15 = vsyncpa [#allocation6 + $0x1], 0 }
   0x6   :  { %16 = vsyncpa [#allocation4], 0 }
   0x7   :  { %18 = vsyncpa [#allocation4 + $0x1], 0 }
   0x8   :  { %19 = vsyncpa [#allocation10], 0 }
   0x9   :  { %21 = vsyncpa [#allocation10 + $0x1], 0  ;;  %s1037_s15 = smov 0   ;;  %s1039_s16 = smov 0  }
   0xa   :  { %s1041_s17 = smov 0   ;;  %s1043_s18 = smov 0  }
   0xb   :  { %s1045_s19 = smov 0   ;;  %s1047_s20 = smov 0  }
   0xc LB: > { %1350 = sst [smem:[#allocation15_spill]] %s999_s19  ;;  %s1068_s21 = sadd.s32 4294967295, %s1003_s20   ;;  %s1003_s20 = sphi %s1047_s20, %s27_s20   ;;  %s999_s19 = sphi %s1045_s19, %s1374_s19   ;;  %s995_s18 = sphi %s1043_s18, %s1373_s18   ;;  %s991_s17 = sphi %s1041_s17, %s1377_s17   ;;  %s987_s16 = sphi %s1039_s16, %s1376_s16   ;;  %s983_s15 = sphi %s1037_s15, %s1375_s15  }
   0xd   : > { %1351 = sst [smem:[#allocation16_spill]] %s1003_s20  ;;  %s674_s22 = sadd.s32 4294967294, %s1003_s20  }
   0xe   : > { %s39_s23 = sadd.s32 1, %s999_s19  ;;  %s48_s24 = sadd.s32 1, %s991_s17 }
   0xf   : > { %p41_p0 = scmp.ge.s32.totalorder %s39_s23, 2  ;;  %p55_p1 = scmp.ne.s32.totalorder %s991_s17, %s987_s16 }
  0x10   : > { %p56_p2 = scmp.eq.s32.totalorder %s1003_s20, 0  ;;  %p61_p3 = scmp.ne.s32.totalorder %s987_s16, %s983_s15 }
  0x11   : > { %s1379_s23 = smov (%p41_p0, %s39_s23), 0  ;;  %p62_p5 = scmp.eq.s32.totalorder %s1068_s21, 0 }
  0x12   : > { %1352 = sst [smem:[#allocation17_spill]] %s1379_s23  ;;  %p1080_p4 = por %p56_p2, %p55_p1 }
  0x13   : > { %s43_s26 = ssub.s32 %s999_s19, %s1379_s23  ;;  %p139_p6 = scmp.eq.s32.totalorder %s1068_s21, 1 }
  0x14   : > { %p46_p7 = scmp.eq.s32.totalorder %s43_s26, 0  ;;  %p1088_p8 = por %p62_p5, %p61_p3 }
  0x15   : > { %p1092_p9 = por %p139_p6, %p55_p1  ;;  %p145_p10 = scmp.eq.s32.totalorder %s674_s22, 1 }
  0x16   : > { %s1354_s27 = scalar_select %p1088_p8, 1, 0 }
  0x17   : > { %s1355_s28 = scalar_select %p1092_p9, 1, 0 }
  0x18   : > { %s1097_s29 = scalar_select %p46_p7, %s991_s17, %s48_s24  }
  0x19   : > { %p1099_p11 = por %p145_p10, %p61_p3  ;;  %p739_p13 = scmp.lt.s32.totalorder %s1003_s20, 2 }
  0x1a   : > { %1356 = sst [smem:[#allocation18_spill]] %s1097_s29  ;;  %s1341_s5 = sand.u32 1, %s991_s17  }
  0x1b   : > { %s1357_s30 = scalar_select %p1099_p11, 1, 0 }
  0x1c   : > { %s1108_s6 = sshll.u32 %s1341_s5, 3  ;;  %s1111_s7 = sshll.u32 %s999_s19, 7 }
  0x1d   : > { %p1115_p0 = pnand %p739_p13, %p1080_p4  ;;  %s212_s9 = sand.u32 1, %s1003_s20  }
  0x1e   : > { %s1359_s1 = sld [smem:[#allocation19_spill]]  ;;  %s216_s13 = scalar_lea.vmem [#allocation5], %s1108_s6 }
  0x1f   : > { %s1358_s8 = scalar_select %p1115_p0, 1, 0 }
  0x20   : > { %s223_s14 = sshll.u32 %s216_s13, 4  ;;  %s1131_s22 = scalar_lea.sflag [#allocation6], %s212_s9  ;;  %s1128_s14 = int_to_ptr.vmem [resolvable:$true] %s223_s14 }
  0x21   : > { %p1137_p4 = pneg %p1115_p0 }
  0x24   : > { %s1124_s12 = scalar_lea.hbm %s1359_s1, %s1111_s7  ;;  %s800_s11 = scalar_lea.hbm %s1359_s1, 256 }
  0x25   : > { %s795_s24 = scalar_lea.hbm %s1124_s12, 128  ;;  %p801_p7 = scmp.lt.u32.totalorder %s1124_s12, %s1359_s1 }
  0x26   : > { %p796_p3 = scmp.ne.s32.totalorder %s1124_s12, %s795_s24  ;;  %p802_p10 = scmp.lt.u32.totalorder %s800_s11, %s795_s24 }
  0x27   : > { %p804_p12 = scmp.lt.u32.totalorder %s795_s24, %s1124_s12 }
  0x28   : > { %p798_p5 = pnand %p1137_p4, %p796_p3  ;;  %p803_p13 = por %p802_p10, %p801_p7 }
  0x2a   : > { %p799_p6 = pneg %p798_p5  ;;  %p805_p1 = por %p804_p12, %p803_p13 }
  0x2c   : > { %p806_p2 = pnand %p805_p1, %p799_p6 }
  0x2e   : > { %809 = shalt.err (!%p806_p2)
}
  0x2f   : > { %s810_s9 = scalar_lea.vmem %s1128_s14, 128  ;;  %s1005_s26 = smov [#allocation5]  }
  0x30   : > { %p811_p3 = scmp.ne.s32.totalorder %s1128_s14, %s810_s9  ;;  %s815_s10 = sshll.u32 %s1005_s26, 4  ;;  %s816_s10 = int_to_ptr.vmem [resolvable:$false] %s815_s10 }
  0x31   : > { %s817_s5 = scalar_lea.vmem %s816_s10, 256  ;;  %p818_p9 = scmp.lt.s32.totalorder %s1128_s14, %s816_s10 }
  0x32   : > { %p813_p5 = pnand %p811_p3, %p1137_p4  ;;  %p819_p8 = scmp.lt.s32.totalorder %s817_s5, %s810_s9 }
  0x34   : > { %p814_p11 = pneg %p813_p5  ;;  %p820_p7 = por %p819_p8, %p818_p9 }
  0x36   : > { %p821_p10 = pnand %p820_p7, %p814_p11 }
  0x38   : > { %824 = shalt.err (!%p821_p10)
}
  0x39   : > { %728 = dma.hbm_to_vmem [thread:$0]  (!%p1115_p0), %s1124_s12, 128, %s1128_s14, %s1131_s22  }
  0x3a   : > { %p1361_p12 = scmp.lt.s32.totalorder %s1003_s20, 3  ;;  %p1362_p1 = scmp.ge.s32.totalorder %s1003_s20, 1 }
  0x3b   : > { %s1173_s9 = scalar_lea.hbm %s1336_s0, %s1111_s7  ;;  %s197_s26 = scalar_lea.vmem [#allocation2], %s1108_s6 }
  0x3c   : > { %p1165_p2 = pnand %p1362_p1, %p1361_p12  ;;  %s205_s10 = sshll.u32 %s197_s26, 4  ;;  %s1176_s10 = int_to_ptr.vmem [resolvable:$true] %s205_s10 }
  0x3d   : > { %s1182_s5 = scalar_lea.hbm %s1338_s2, %s1111_s7  ;;  %s1364_s1 = sand.u32 1, %s991_s17  }
  0x3e   : > { %s1363_s24 = scalar_select %p1165_p2, 1, 0 }
  0x3f   : > { %s194_s23 = scalar_lea.sflag [#allocation3], %s1364_s1  ;;  %s825_s19 = scalar_lea.hbm %s1173_s9, 128 }
  0x40   : > { %p826_p8 = scmp.ne.s32.totalorder %s1173_s9, %s825_s19  ;;  %s830_s29 = scalar_lea.hbm %s1336_s0, 256 }
  0x41   : > { %p831_p6 = scmp.lt.u32.totalorder %s1173_s9, %s1336_s0  ;;  %p832_p13 = scmp.lt.u32.totalorder %s830_s29, %s825_s19 }
  0x42   : > { %p828_p9 = pnand %p826_p8, %p1137_p4  ;;  %p834_p5 = scmp.lt.u32.totalorder %s825_s19, %s1173_s9 }
  0x43   : > { %p833_p3 = por %p832_p13, %p831_p6 }
  0x44   : > { %p829_p11 = pneg %p828_p9 }
  0x45   : > { %p835_p7 = por %p834_p5, %p833_p3 }
  0x47   : > { %p836_p10 = pnand %p835_p7, %p829_p11 }
  0x49   : > { %839 = shalt.err (!%p836_p10)
}
  0x4a   : > { %s840_s1 = scalar_lea.vmem %s1176_s10, 128  ;;  %s1006_s7 = smov [#allocation2]  }
  0x4b   : > { %p841_p12 = scmp.ne.s32.totalorder %s1176_s10, %s840_s1  ;;  %s845_s12 = sshll.u32 %s1006_s7, 4  ;;  %s846_s12 = int_to_ptr.vmem [resolvable:$false] %s845_s12 }
  0x4c   : > { %s847_s20 = scalar_lea.vmem %s846_s12, 256  ;;  %p848_p9 = scmp.lt.s32.totalorder %s1176_s10, %s846_s12 }
  0x4d   : > { %p843_p1 = pnand %p841_p12, %p1137_p4  ;;  %p849_p2 = scmp.lt.s32.totalorder %s847_s20, %s840_s1 }
  0x4f   : > { %p844_p8 = pneg %p843_p1  ;;  %p850_p6 = por %p849_p2, %p848_p9 }
  0x51   : > { %p851_p13 = pnand %p850_p6, %p844_p8 }
  0x53   : > { %854 = shalt.err (!%p851_p13)
}
  0x54   : > { %725 = dma.hbm_to_vmem [thread:$0]  (!%p1115_p0), %s1173_s9, 128, %s1176_s10, %s194_s23  }
  0x55   : > { %s234_s19 = scalar_lea.vmem [#allocation7], %s1108_s6  ;;  %s855_s14 = scalar_lea.hbm %s1182_s5, 128 }
  0x56   : > { %s241_s29 = sshll.u32 %s234_s19, 4  ;;  %p856_p11 = scmp.ne.s32.totalorder %s1182_s5, %s855_s14  ;;  %s242_s29 = int_to_ptr.vmem [resolvable:$true] %s241_s29 }
  0x57   : > { %s860_s26 = scalar_lea.hbm %s1338_s2, 256  ;;  %p861_p5 = scmp.lt.u32.totalorder %s1182_s5, %s1338_s2 }
  0x58   : > { %p858_p2 = pnand %p856_p11, %p1137_p4  ;;  %p862_p7 = scmp.lt.u32.totalorder %s860_s26, %s855_s14 }
  0x59   : > { %p864_p12 = scmp.lt.u32.totalorder %s855_s14, %s1182_s5 }
  0x5a   : > { %p859_p3 = pneg %p858_p2  ;;  %p863_p10 = por %p862_p7, %p861_p5 }
  0x5c   : > { %p865_p1 = por %p864_p12, %p863_p10 }
  0x5e   : > { %p866_p8 = pnand %p865_p1, %p859_p3 }
  0x60   : > { %869 = shalt.err (!%p866_p8)
}
  0x61   : > { %s870_s23 = scalar_lea.vmem %s242_s29, 128  ;;  %s1007_s6 = smov [#allocation7]  }
  0x62   : > { %p871_p9 = scmp.ne.s32.totalorder %s242_s29, %s870_s23  ;;  %s875_s9 = sshll.u32 %s1007_s6, 4  ;;  %s876_s9 = int_to_ptr.vmem [resolvable:$false] %s875_s9 }
  0x63   : > { %s877_s10 = scalar_lea.vmem %s876_s9, 256  ;;  %p878_p11 = scmp.lt.s32.totalorder %s242_s29, %s876_s9 }
  0x64   : > { %p873_p6 = pnand %p871_p9, %p1137_p4  ;;  %p879_p2 = scmp.lt.s32.totalorder %s877_s10, %s870_s23 }
  0x66   : > { %p874_p13 = pneg %p873_p6  ;;  %p880_p0 = por %p879_p2, %p878_p11 }
  0x68   : > { %p881_p5 = pnand %p880_p0, %p874_p13 }
  0x6a   : > { %884 = shalt.err (!%p881_p5)
}
  0x6b   : > { %p1365_p7 = scmp.ne.s32.totalorder %s1358_s8, 0  ;;  %p1366_p3 = scmp.ne.s32.totalorder %s1363_s24, 0 }
  0x6c   : > { %s1229_s25 = sand.u32 (!%p1366_p3), 1, %s987_s16   ;;  %p1367_p0 = scmp.ne.s32.totalorder (!%p1366_p3), %s1354_s27, 0 }
  0x6d   : > { %731 = dma.hbm_to_vmem [thread:$0]  (!%p1365_p7), %s1182_s5, 128, %s242_s29, %s1131_s22  }
  0x6e   : > { %250 = sbr.rel (%p1366_p3) target bundleno = 881 (0x371), region = 32  ;;  %s1232_s12 = sshll.u32 (!%p1366_p3), %s1229_s25, 3 }
  0x6f   : > { %s253_s20 = scalar_lea.sflag (!%p1366_p3), [#allocation3], %s1229_s25  ;;  %s256_s19 = scalar_lea.vmem (!%p1366_p3), [#allocation2], %s1232_s12 }
  0x75   : > { %966 = dma.done.wait (%p1367_p0), %s253_s20, 128  }
  0x76   : > { %968 = vsyncadd (%p1367_p0), %s253_s20, 4294967168  ;;  %s261_s8 = sand.u32 1, %s1068_s21   ;;  %s265_s24 = scalar_lea.vmem [#allocation5], %s1232_s12 }
  0x77   : > { %s262_s22 = scalar_lea.sflag [#allocation6], %s261_s8 }
  0x78   : > { %970 = dma.done.wait (%p1367_p0), %s262_s22, 256  }
  0x79   : > { %972 = vsyncadd (%p1367_p0), %s262_s22, 4294967040  ;;  %v1008_v0 = vmov 0.0   ;;  %vm1009_vm0 = vmmov 0   ;;  %vm316_vm1 = vcmask 261120   ;;  %v315_v1 = vld [vmem:[%s265_s24] sm:$0xff]  ;;  %v314_v2 = vld [vmem:[%s256_s19] sm:$0xff] }
  0x7a   : > { %702 = vmatprep.subr.mxu0 %v1008_v0  ;;  %704 = vmatprep.mubr.msk.f32.mxu0 %vm1009_vm0, %v1008_v0  ;;  %vm394_vm2 = vcmask 64512   ;;  %s274_s21 = scalar_lea.vmem [#allocation7], %s1232_s12  ;;  %s313_s27 = scalar_lea.vmem [#allocation9], %s1232_s12 }
  0x7b   : > { %707 = vmatprep.subr.mxu1 %v1008_v0  ;;  %709 = vmatprep.mubr.msk.f32.mxu1 %vm1009_vm0, %v1008_v0  ;;  %v407_v12 = vld [vmem:[%s274_s21] sm:$0xff]  ;;  %s694_s5 = sshll.u32 %s995_s18, 7  ;;  %s517_s13 = sshll.u32 %s313_s27, 4  ;;  %s518_s13 = int_to_ptr.vmem [resolvable:$true] %s517_s13 }
  0x7c   : > { %703 = vmatpush3.xpose.msk.msra.mxu0 %vm316_vm1, %v315_v1  ;;  %708 = vmatpush3.msra.mxu1 %v407_v12  ;;  %s1260_s11 = scalar_lea.hbm %s1340_s4, %s694_s5  ;;  %s489_s26 = scalar_lea.sflag [#allocation10], %s1229_s25 }
  0x7d   : > { %s885_s1 = scalar_lea.vmem %s518_s13, 128  ;;  %p1368_p10 = scmp.ne.s32.totalorder %s1355_s28, 0 }
  0x7e   : > { %p886_p4 = scmp.ne.s32.totalorder %s518_s13, %s885_s1  ;;  %s1010_s7 = smov [#allocation9]  }
  0x7f   : > { %705 = vmatmul.mubr.msk.f32.vlgmr.msra.gmra.mrb[0].mxu0 %vm316_vm1, %v314_v2  ;;  %s889_s23 = sshll.u32 %s1010_s7, 4  ;;  %s890_s23 = int_to_ptr.vmem [resolvable:$false] %s889_s23 }
  0x80   : > { %p887_p12 = pnand %p886_p4, %p1368_p10  ;;  %s891_s6 = scalar_lea.vmem %s890_s23, 256 }
  0x81   : > { %p892_p8 = scmp.lt.s32.totalorder %s518_s13, %s890_s23  ;;  %p893_p9 = scmp.lt.s32.totalorder %s891_s6, %s885_s1 }
  0x82   : > { %p888_p1 = pneg %p887_p12 }
  0x83   : > { %p894_p6 = por %p893_p9, %p892_p8 }
  0x85   : > { %p895_p13 = pnand %p894_p6, %p888_p1 }
 0x152   : > { %v389_v3 = vpop.f32.mrb[0].mxu0 }
 0x153   : > { %v393_v4 = vmul.f32 0.17677669, %v389_v3  ;;  %v706_v5 = vpop.f32.mrb[1].mxu0 }
 0x155   : > { %v395_v6 = vsel %vm394_vm2, %v393_v4, -inf }
 0x156   : > { %396 = vmax.xlane.f32.xlu0 %v395_v6 }
 0x1e3   : > { %v397_v7 = vpop.xlane.xlu0 %396 }
 0x1e4   : > { %v398_v8 = vsub.f32 %v393_v4, %v397_v7 }
 0x1e6   : > { %v399_v9 = vmul.f32 1.442695, %v398_v8 }
 0x1e8   : > { %791 = vpow2.f32 %v399_v9 }
 0x1f2   : > { %v792_v10 = vpop.eup %791 }
 0x1f3   : > { %v401_v11 = vsel %vm394_vm2, %v792_v10, 0.0 }
 0x1f4   : > { %402 = vadd.xlane.f32.xlu0 %v401_v11 }
 0x281   : > { %v403_v13 = vpop.xlane.xlu0 %402 }
 0x282   : > { %793 = vrcp.f32 %v403_v13 }
 0x28c   : > { %v794_v14 = vpop.eup %793 }
 0x28d   : > { %v406_v15 = vmul.f32 %v794_v14, %v792_v10 }
 0x28f   : > { %710 = vmatmul.mubr.msk.f32.vlgmr.msra.gmra.mrb[0].mxu1 %vm394_vm2, %v406_v15  ;;  %482 = vst.msk [vmem:[%s313_s27] sm:$0xff] %vm394_vm2, %v406_v15 }
 0x290   : > { %898 = shalt.err (!%p895_p13)
}
 0x291   : > { %s899_s9 = scalar_lea.hbm %s1260_s11, 128  ;;  %s903_s19 = scalar_lea.hbm %s1340_s4, 256 }
 0x292   : > { %p900_p11 = scmp.ne.s32.totalorder %s1260_s11, %s899_s9  ;;  %p904_p7 = scmp.lt.u32.totalorder %s1260_s11, %s1340_s4 }
 0x293   : > { %p905_p3 = scmp.lt.u32.totalorder %s903_s19, %s899_s9  ;;  %p907_p4 = scmp.lt.u32.totalorder %s899_s9, %s1260_s11 }
 0x294   : > { %p901_p2 = pnand %p900_p11, %p1368_p10 }
 0x295   : > { %p906_p0 = por %p905_p3, %p904_p7 }
 0x296   : > { %p902_p5 = pneg %p901_p2 }
 0x297   : > { %p908_p12 = por %p907_p4, %p906_p0 }
 0x299   : > { %p909_p1 = pnand %p908_p12, %p902_p5 }
 0x29b   : > { %912 = shalt.err (!%p909_p1)
}
 0x29c   : > { %719 = dma.vmem_to_hbm [thread:$0]  (%p1368_p10), %s518_s13, 128, %s1260_s11, %s489_s26  }
 0x29d   : > { %s306_s24 = scalar_lea.vmem [#allocation8], %s1232_s12  ;;  %s1286_s14 = scalar_lea.hbm %s1339_s3, %s694_s5 }
 0x29e   : > { %s503_s21 = sshll.u32 %s306_s24, 4  ;;  %s484_s1 = scalar_lea.sflag [#allocation4], %s1229_s25  ;;  %s1288_s21 = int_to_ptr.vmem [resolvable:$true] %s503_s21 }
 0x29f   : > { %s913_s7 = scalar_lea.vmem %s1288_s21, 128  ;;  %s1011_s18 = smov [#allocation8]  }
 0x2a0   : > { %p914_p8 = scmp.ne.s32.totalorder %s1288_s21, %s913_s7  ;;  %s917_s12 = sshll.u32 %s1011_s18, 4  ;;  %s918_s12 = int_to_ptr.vmem [resolvable:$false] %s917_s12 }
 0x2a1   : > { %s919_s5 = scalar_lea.vmem %s918_s12, 256  ;;  %p920_p13 = scmp.lt.s32.totalorder %s1288_s21, %s918_s12 }
 0x2a2   : > { %p915_p9 = pnand %p914_p8, %p1368_p10  ;;  %p921_p11 = scmp.lt.s32.totalorder %s919_s5, %s913_s7 }
 0x2a4   : > { %p916_p6 = pneg %p915_p9  ;;  %p922_p2 = por %p921_p11, %p920_p13 }
 0x2a6   : > { %p923_p5 = pnand %p922_p2, %p916_p6 }
 0x362   : > { %v477_v16 = vpop.f32.mrb[0].mxu1 }
 0x363   : > { %481 = vst.msk [vmem:[%s306_s24] sm:$0xff] %vm316_vm1, %v477_v16  ;;  %v711_v17 = vpop.f32.mrb[1].mxu1 }
 0x364   : > { %926 = shalt.err (!%p923_p5)
}
 0x365   : > { %s927_s25 = scalar_lea.hbm %s1286_s14, 128  ;;  %s931_s26 = scalar_lea.hbm %s1339_s3, 256 }
 0x366   : > { %p928_p7 = scmp.ne.s32.totalorder %s1286_s14, %s927_s25  ;;  %p932_p4 = scmp.lt.u32.totalorder %s1286_s14, %s1339_s3 }
 0x367   : > { %p933_p12 = scmp.lt.u32.totalorder %s931_s26, %s927_s25  ;;  %p935_p8 = scmp.lt.u32.totalorder %s927_s25, %s1286_s14 }
 0x368   : > { %p929_p3 = pnand %p928_p7, %p1368_p10 }
 0x369   : > { %p934_p1 = por %p933_p12, %p932_p4 }
 0x36a   : > { %p930_p0 = pneg %p929_p3 }
 0x36b   : > { %p936_p9 = por %p935_p8, %p934_p1 }
 0x36d   : > { %p937_p6 = pnand %p936_p9, %p930_p0 }
 0x36f   : > { %940 = shalt.err (!%p937_p6)
}
 0x370   : > { %718 = dma.vmem_to_hbm [thread:$0]  (%p1368_p10), %s1288_s21, 128, %s1286_s14, %s484_s1  }
 0x371 PF: > { %s1369_s9 = sld [smem:[#allocation16_spill]]  ;;  %s529_s10 = sand.u32 1, %s983_s15  }
 0x372   : > { %p1370_p13 = scmp.ne.s32.totalorder %s1357_s30, 0  ;;  %s530_s20 = scalar_lea.sflag [#allocation4], %s529_s10 }
 0x377   : > { %p1371_p11 = scmp.ge.s32.totalorder %s1369_s9, 2 }
 0x379   : > { %p733_p2 = pnand %p1371_p11, %p1370_p13 }
 0x37b   : > { %974 = dma.done.wait (!%p733_p2), %s530_s20, 128  }
 0x37c   : > { %976 = vsyncadd (!%p733_p2), %s530_s20, 4294967168  ;;  %s539_s19 = scalar_lea.sflag [#allocation10], %s529_s10 }
 0x37d   : > { %978 = dma.done.wait (!%p733_p2), %s539_s19, 128  }
 0x37e   : > { %980 = vsyncadd (!%p733_p2), %s539_s19, 4294967168  ;;  %s27_s20 = sadd.s32 1, %s1369_s9   ;;  %s1372_s28 = sld [smem:[#allocation18_spill]] }
 0x37f   : > { %p24_p5 = scmp.ge.s32.totalorder %s27_s20, 4   ;;  %s1373_s18 = sld [smem:[#allocation15_spill]] }
 0x380   : > { %s1374_s19 = sld [smem:[#allocation17_spill]]  ;;  %s1375_s15 = smov %s987_s16 }
 0x381   : > { %s1376_s16 = smov %s991_s17  ;;  %26 = sbr.rel (!%p24_p5) target bundleno = 12 (0xc), region = 118 }
 0x384   : > { %s1377_s17 = smov %s1372_s28 }
 0x388   :  { %544 = vsyncpa [#allocation3], 1 }
 0x389   :  { %546 = vsyncpa [#allocation3 + $0x1], 1 }
 0x38a   :  { %547 = vsyncpa [#allocation6], 1 }
 0x38b   :  { %549 = vsyncpa [#allocation6 + $0x1], 1 }
 0x38c   :  { %550 = vsyncpa [#allocation4], 1 }
 0x38d   :  { %552 = vsyncpa [#allocation4 + $0x1], 1 }
 0x38e   :  { %553 = vsyncpa [#allocation10], 1 }
 0x38f   :  { %555 = vsyncpa [#allocation10 + $0x1], 1 }

</bundles_post_ra>
